<compile_context>
chip_gen: v7x
topology: tpu7x:2x2x1
jax: 0.10.0
libtpu: 0.0.40
codegen_flags: <defaults>
</compile_context>

<pallas_src>
import math

import jax
import jax.numpy as jnp
import numpy as np
from jax.experimental import pallas as pl
from jax.experimental.pallas import tpu as pltpu


def _round_up(x, m):
    return (x + m - 1) // m * m


def _pick_tile(dim, preferred, align, min_tiles=1):
    """Largest multiple of `align` that (a) is <= `preferred`, (b) divides
    round_up(dim, align) and (c) leaves at least `min_tiles` grid tiles when
    `dim` is large enough to split."""
    dim_al = _round_up(dim, align)
    cap = min(preferred, dim_al)
    if min_tiles > 1 and dim_al >= min_tiles * align:
        cap = min(cap, dim_al // min_tiles)
    cap = max(align, cap // align * align)
    for cand in range(cap, align - 1, -align):
        if dim_al % cand == 0:
            return cand
    return align


def _pad2d(a, rows, cols):
    pr, pc = rows - a.shape[0], cols - a.shape[1]
    if pr == 0 and pc == 0:
        return a
    return jnp.pad(a, ((0, pr), (0, pc)))


def _vmem_budget_bytes():
    """Generation-aware VMEM budget: ~96 MiB on v5e/v6e (128 MiB physical),
    ~51 MiB on v7x (64 MiB physical per TensorCore)."""
    cap = 128 * 1024 * 1024
    try:
        cap = int(getattr(pltpu.get_tpu_info(), "vmem_capacity_bytes", cap)) or cap
    except Exception:
        pass
    return int(min(96 << 20, cap * 4 // 5))


def _make_lora_kernel(tk_eff, n_k_tiles, epi_lhs_dtype):
    """Grid = (M tiles, N tiles, K tiles); K (reduction) is the innermost axis."""

    def kernel(x_ref, wa_ref, wb_ref, o_ref, xa_acc):
        k = pl.program_id(2)

        @pl.when(k == 0)
        def _():
            xa_acc[...] = jnp.zeros_like(xa_acc)

        # W_a is VMEM-resident for the whole kernel; slice this step's K chunk.
        if n_k_tiles == 1:
            wa_blk = wa_ref[...]
        else:
            start = pl.multiple_of(k * tk_eff, tk_eff)
            wa_blk = wa_ref[pl.ds(start, tk_eff), :]

        # Accumulate the low-rank projection for this row block: (tm,tk)@(tk,R).
        xa_acc[...] += jnp.dot(x_ref[...], wa_blk,
                               preferred_element_type=jnp.float32)

        # Epilogue: apply the (alpha-scaled) W_b exactly once per (row, col) block.
        @pl.when(k == n_k_tiles - 1)
        def _():
            o_ref[...] = jnp.dot(xa_acc[...].astype(epi_lhs_dtype), wb_ref[...],
                                 preferred_element_type=jnp.float32
                                 ).astype(o_ref.dtype)

    return kernel


def lora_forward(x, w_a, w_b, alpha, *, tm=512, tk=2048, tn=4096):
    """x: (..., in_dim); w_a: (in_dim, rank); w_b: (rank, out_dim)."""
    in_dim, rank = w_a.shape
    rank_b, out_dim = w_b.shape
    assert rank_b == rank and x.shape[-1] == in_dim

    lead = x.shape[:-1]
    m = int(math.prod(lead)) if lead else 1
    x2d = x.reshape(m, in_dim)

    in_bytes = x2d.dtype.itemsize
    out_bytes = in_bytes
    align_m = max(8, 32 // in_bytes)          # f32: 8, bf16: 16, int8/fp8: 32
    r_pad = _round_up(rank, 128)              # lane-dense LoRA intermediate

    budget = _vmem_budget_bytes()
    headroom = budget - (4 << 20)             # slack for Mosaic internal scratch

    # ---- tile selection: start big, shrink only if VMEM does not fit -------
    tm_pref, tk_pref, tn_pref = tm, tk, tn
    for _ in range(16):
        tm_eff = _pick_tile(m, tm_pref, align_m, min_tiles=2)   # 2 TCs on v7x
        tk_eff = _pick_tile(in_dim, tk_pref, 128)
        tn_eff = _pick_tile(out_dim, tn_pref, 128)
        k_pad = _round_up(in_dim, tk_eff)
        usage = (2 * tm_eff * tk_eff * in_bytes        # x (double-buffered)
                 + 2 * k_pad * r_pad * in_bytes        # resident W_a
                 + 2 * r_pad * tn_eff * in_bytes       # alpha * W_b
                 + 2 * tm_eff * tn_eff * out_bytes     # output tile
                 + tm_eff * r_pad * 4)                 # f32 accumulator
        if usage <= headroom:
            break
        if tk_pref > 512:
            tk_pref //= 2
        elif tn_pref > 512:
            tn_pref //= 2
        elif tm_pref > 64:
            tm_pref //= 2
        else:
            break

    # A single full-extent K block is legal even when in_dim % 128 != 0; use it
    # so x never needs a zero-padded HBM copy along K.
    if k_pad != in_dim and tk_eff == k_pad:
        tk_eff = k_pad = in_dim

    n_pad = _round_up(out_dim, tn_eff)
    grid_m = pl.cdiv(m, tm_eff)               # partial last M tile is masked
    grid_n = n_pad // tn_eff
    grid_k = k_pad // tk_eff
    grid = (grid_m, grid_n, grid_k)

    # Zero-pad only where required (K reduction) or where arrays are tiny.
    x_p = x2d if k_pad == in_dim else jnp.pad(x2d, ((0, 0), (0, k_pad - in_dim)))
    wa_p = _pad2d(w_a, k_pad, r_pad)
    # Fold alpha into the tiny (rank, out_dim) W_b once, in the input dtype.
    wb_scaled = (jnp.asarray(alpha, jnp.float32)
                 * w_b.astype(jnp.float32)).astype(x.dtype)
    wb_p = _pad2d(wb_scaled, r_pad, n_pad)

    cost = pl.CostEstimate(
        flops=2 * m * k_pad * r_pad * grid_n + 2 * m * r_pad * n_pad,
        transcendentals=0,
        bytes_accessed=(grid_n * m * k_pad * in_bytes    # x (re-read per N tile)
                        + k_pad * r_pad * in_bytes       # W_a (read once)
                        + r_pad * n_pad * in_bytes       # alpha * W_b
                        + m * n_pad * out_bytes),        # output
    )

    kernel = _make_lora_kernel(tk_eff, grid_k, x.dtype)

    def build(use_single_buffer):
        def const_spec(shape, index_map, is_const):
            if use_single_buffer and is_const:
                # Block index never changes -> second pipeline buffer is waste.
                return pl.BlockSpec(shape, index_map, pipeline_mode=pl.Buffered(1))
            return pl.BlockSpec(shape, index_map)

        return pl.pallas_call(
            kernel,
            out_shape=jax.ShapeDtypeStruct((m, n_pad), x.dtype),
            grid_spec=pltpu.PrefetchScalarGridSpec(
                num_scalar_prefetch=0,
                grid=grid,
                in_specs=[
                    pl.BlockSpec((tm_eff, tk_eff), lambda i, n, k: (i, k)),    # x
                    const_spec((k_pad, r_pad), lambda i, n, k: (0, 0), True),  # W_a
                    const_spec((r_pad, tn_eff), lambda i, n, k: (0, n),
                               grid_n == 1),                                   # a*W_b
                ],
                out_specs=pl.BlockSpec((tm_eff, tn_eff), lambda i, n, k: (i, n)),
                scratch_shapes=[pltpu.VMEM((tm_eff, r_pad), jnp.float32)],
            ),
            compiler_params=pltpu.CompilerParams(
                dimension_semantics=("parallel", "parallel", "arbitrary"),
                vmem_limit_bytes=budget,
            ),
            cost_estimate=cost,
        )

    try:
        out_p = build(True)(x_p, wa_p, wb_p)
    except Exception:
        # pl.Buffered(1) unsupported on this jax/libtpu: fall back to default
        # double-buffering for the (tiny) weight blocks; everything else same.
        out_p = build(False)(x_p, wa_p, wb_p)

    out2d = out_p if n_pad == out_dim else out_p[:, :out_dim]
    return out2d.reshape(*lead, out_dim)


if __name__ == "__main__":
    key = jax.random.PRNGKey(0)
    k1, k2, k3, k4, k5 = jax.random.split(key, 5)

    def torch_like_init(kx, in_dim, rank):
        # torch init: W_a ~ N(0,1)/sqrt(rank), W_b = 0.
        return jax.random.normal(kx, (in_dim, rank), jnp.float32) / jnp.sqrt(
            jnp.asarray(rank, jnp.float32))

    def reference(x, w_a, w_b, alpha):
        xn = np.asarray(x, np.float64)
        return alpha * ((xn @ np.asarray(w_a, np.float64))
                        @ np.asarray(w_b, np.float64))

    ok = True

    # Case 1: module-default-ish shapes; zero-init W_b and a nonzero W_b.
    batch, seq, in_dim, out_dim, rank, alpha = 2, 8, 32, 32, 4, 8.0
    x = jax.random.normal(k1, (batch, seq, in_dim), jnp.float32)
    w_a = torch_like_init(k2, in_dim, rank)
    w_b0 = jnp.zeros((rank, out_dim), jnp.float32)
    w_b1 = jax.random.normal(k3, (rank, out_dim), jnp.float32) * 0.1

    out0 = lora_forward(x, w_a, w_b0, alpha)
    out1 = lora_forward(x, w_a, w_b1, alpha)
    jax.block_until_ready((out0, out1))
    assert out0.shape == (batch, seq, out_dim)
    ok &= np.allclose(np.asarray(out0), reference(x, w_a, w_b0, alpha),
                      atol=2e-3, rtol=2e-3)
    ok &= np.allclose(np.asarray(out1), reference(x, w_a, w_b1, alpha),
                      atol=2e-3, rtol=2e-3)

    # Case 2: non-128-aligned in/out dims (single full-extent K block, x is
    # never padded in HBM), rank 5.
    b2, s2, in2, out2, r2, a2 = 2, 12, 48, 40, 5, 2.0
    x2 = jax.random.normal(k4, (b2, s2, in2), jnp.float32)
    wa2 = torch_like_init(k5, in2, r2)
    wb2 = jax.random.normal(jax.random.PRNGKey(1), (r2, out2), jnp.float32) * 0.1
    o2 = lora_forward(x2, wa2, wb2, a2)
    jax.block_until_ready(o2)
    assert o2.shape == (b2, s2, out2)
    ok &= np.allclose(np.asarray(o2), reference(x2, wa2, wb2, a2),
                      atol=2e-3, rtol=2e-3)

    # Case 3: force a multi-step K reduction (exercises the resident-W_a
    # pl.ds slicing and the accumulator init / epilogue) with tk=128.
    b3, s3, in3, out3, r3, a3 = 2, 8, 256, 64, 4, 4.0
    x3 = jax.random.normal(jax.random.PRNGKey(2), (b3, s3, in3), jnp.float32)
    wa3 = torch_like_init(jax.random.PRNGKey(3), in3, r3)
    wb3 = jax.random.normal(jax.random.PRNGKey(4), (r3, out3), jnp.float32) * 0.1
    o3 = lora_forward(x3, wa3, wb3, a3, tk=128)
    jax.block_until_ready(o3)
    assert o3.shape == (b3, s3, out3)
    ok &= np.allclose(np.asarray(o3), reference(x3, wa3, wb3, a3),
                      atol=2e-3, rtol=2e-3)

    if not ok:
        raise SystemExit("numerical mismatch vs. reference")
    print("KERNEL_OK")
</pallas_src>

<mosaic_0001>
module attributes {stable_mosaic.version = 11 : i64} {
  func.func @kernel(%arg0: i32, %arg1: i32, %arg2: i32, %arg3: memref<8x32xf32, #tpu.memory_space<vmem>>, %arg4: memref<32x128xf32, #tpu.memory_space<vmem>>, %arg5: memref<128x128xf32, #tpu.memory_space<vmem>>, %arg6: memref<8x128xf32, #tpu.memory_space<vmem>>, %arg7: memref<8x128xf32, #tpu.memory_space<vmem>>) attributes {dimension_semantics = [#tpu.dimension_semantics<parallel>, #tpu.dimension_semantics<parallel>, #tpu.dimension_semantics<arbitrary>], iteration_bounds = array<i64: 2, 1, 1>, scalar_prefetch = 0 : i64, scratch_operands = 1 : i64, tpu.core_type = #tpu.core_type<tc>, window_params = [{transform_indices = @transform_0, window_bounds = array<i64: 8, 32>}, {pipeline_mode = #tpu.pipeline_mode<synchronous>, transform_indices = @transform_1, window_bounds = array<i64: 32, 128>}, {pipeline_mode = #tpu.pipeline_mode<synchronous>, transform_indices = @transform_2, window_bounds = array<i64: 128, 128>}, {transform_indices = @transform_3, window_bounds = array<i64: 8, 128>}]} {
    %c0_i32 = arith.constant 0 : i32
    %0 = arith.cmpi eq, %arg2, %c0_i32 : i32
    %1 = arith.extui %0 : i1 to i32
    %c0_i32_0 = arith.constant 0 : i32
    %2 = arith.cmpi ne, %1, %c0_i32_0 : i32
    scf.if %2 {
      %cst_10 = arith.constant 0.000000e+00 : f32
      %12 = vector.broadcast %cst_10 : f32 to vector<8x128xf32>
      %c0_11 = arith.constant 0 : index
      %c0_12 = arith.constant 0 : index
      %13 = vector.load %arg7[%c0_11, %c0_12] : memref<8x128xf32, #tpu.memory_space<vmem>>, vector<8x128xf32>
      tpu.vector_store %arg7[%c0_11, %c0_12], %12 {strides = array<i32>} : memref<8x128xf32, #tpu.memory_space<vmem>>, vector<8x128xf32>,
    } else {
    }
    %c0 = arith.constant 0 : index
    %c0_1 = arith.constant 0 : index
    %3 = vector.load %arg4[%c0, %c0_1] : memref<32x128xf32, #tpu.memory_space<vmem>>, vector<32x128xf32>
    %c0_2 = arith.constant 0 : index
    %c0_3 = arith.constant 0 : index
    %4 = vector.load %arg7[%c0_2, %c0_3] : memref<8x128xf32, #tpu.memory_space<vmem>>, vector<8x128xf32>
    %c0_4 = arith.constant 0 : index
    %c0_5 = arith.constant 0 : index
    %5 = vector.load %arg3[%c0_4, %c0_5] : memref<8x32xf32, #tpu.memory_space<vmem>>, vector<8x32xf32>
    %cst = arith.constant dense<0.000000e+00> : vector<8x128xf32>
    %6 = tpu.matmul %5, %3, %cst {dimension_numbers = #tpu.dot_dimension_numbers<[1], [0], [0], [1], [0, 0, 1, 1], [], []>} : vector<8x32xf32>, vector<32x128xf32>, vector<8x128xf32> -> vector<8x128xf32>
    %7 = arith.addf %4, %6 : vector<8x128xf32>
    %c0_6 = arith.constant 0 : index
    %c0_7 = arith.constant 0 : index
    %8 = vector.load %arg7[%c0_6, %c0_7] : memref<8x128xf32, #tpu.memory_space<vmem>>, vector<8x128xf32>
    tpu.vector_store %arg7[%c0_6, %c0_7], %7 {strides = array<i32>} : memref<8x128xf32, #tpu.memory_space<vmem>>, vector<8x128xf32>,
    %c0_i32_8 = arith.constant 0 : i32
    %9 = arith.cmpi eq, %arg2, %c0_i32_8 : i32
    %10 = arith.extui %9 : i1 to i32
    %c0_i32_9 = arith.constant 0 : i32
    %11 = arith.cmpi ne, %10, %c0_i32_9 : i32
    scf.if %11 {
      %c0_10 = arith.constant 0 : index
      %c0_11 = arith.constant 0 : index
      %12 = vector.load %arg7[%c0_10, %c0_11] : memref<8x128xf32, #tpu.memory_space<vmem>>, vector<8x128xf32>
      %c0_12 = arith.constant 0 : index
      %c0_13 = arith.constant 0 : index
      %13 = vector.load %arg5[%c0_12, %c0_13] : memref<128x128xf32, #tpu.memory_space<vmem>>, vector<128x128xf32>
      %cst_14 = arith.constant dense<0.000000e+00> : vector<8x128xf32>
      %14 = tpu.matmul %12, %13, %cst_14 {dimension_numbers = #tpu.dot_dimension_numbers<[1], [0], [0], [1], [0, 0, 1, 1], [], []>} : vector<8x128xf32>, vector<128x128xf32>, vector<8x128xf32> -> vector<8x128xf32>
      %c0_15 = arith.constant 0 : index
      %c0_16 = arith.constant 0 : index
      %15 = vector.load %arg6[%c0_15, %c0_16] : memref<8x128xf32, #tpu.memory_space<vmem>>, vector<8x128xf32>
      tpu.vector_store %arg6[%c0_15, %c0_16], %14 {strides = array<i32>} : memref<8x128xf32, #tpu.memory_space<vmem>>, vector<8x128xf32>,
    } else {
    }
    return
  }
  func.func @transform_0(%arg0: i32, %arg1: i32, %arg2: i32) -> (i32, i32) {
    %c0_i32 = arith.constant 0 : i32
    return %arg0, %arg2 : i32, i32
  }
  func.func @transform_1(%arg0: i32, %arg1: i32, %arg2: i32) -> (i32, i32) {
    %c0_i32 = arith.constant 0 : i32
    %c0_i32_0 = arith.constant 0 : i32
    %c0_i32_1 = arith.constant 0 : i32
    return %c0_i32, %c0_i32_0 : i32, i32
  }
  func.func @transform_2(%arg0: i32, %arg1: i32, %arg2: i32) -> (i32, i32) {
    %c0_i32 = arith.constant 0 : i32
    %c0_i32_0 = arith.constant 0 : i32
    return %c0_i32, %arg1 : i32, i32
  }
  func.func @transform_3(%arg0: i32, %arg1: i32, %arg2: i32) -> (i32, i32) {
    %c0_i32 = arith.constant 0 : i32
    return %arg0, %arg1 : i32, i32
  }
}

module attributes {stable_mosaic.version = 11 : i64} {
  func.func @kernel(%arg0: i32, %arg1: i32, %arg2: i32, %arg3: memref<8x32xf32, #tpu.memory_space<vmem>>, %arg4: memref<32x128xf32, #tpu.memory_space<vmem>>, %arg5: memref<128x128xf32, #tpu.memory_space<vmem>>, %arg6: memref<8x128xf32, #tpu.memory_space<vmem>>, %arg7: memref<8x128xf32, #tpu.memory_space<vmem>>) attributes {dimension_semantics = [#tpu.dimension_semantics<parallel>, #tpu.dimension_semantics<parallel>, #tpu.dimension_semantics<arbitrary>], iteration_bounds = array<i64: 2, 1, 1>, scalar_prefetch = 0 : i64, scratch_operands = 1 : i64, tpu.core_type = #tpu.core_type<tc>, window_params = [{transform_indices = @transform_0, window_bounds = array<i64: 8, 32>}, {pipeline_mode = #tpu.pipeline_mode<synchronous>, transform_indices = @transform_1, window_bounds = array<i64: 32, 128>}, {transform_indices = @transform_2, window_bounds = array<i64: 128, 128>}, {transform_indices = @transform_3, window_bounds = array<i64: 8, 128>}]} {
    %c0_i32 = arith.constant 0 : i32
    %0 = arith.cmpi eq, %arg2, %c0_i32 : i32
    %1 = arith.extui %0 : i1 to i32
    %c0_i32_0 = arith.constant 0 : i32
    %2 = arith.cmpi ne, %1, %c0_i32_0 : i32
    scf.if %2 {
      %cst_10 = arith.constant 0.000000e+00 : f32
      %12 = vector.broadcast %cst_10 : f32 to vector<8x128xf32>
      %c0_11 = arith.constant 0 : index
      %c0_12 = arith.constant 0 : index
      %13 = vector.load %arg7[%c0_11, %c0_12] : memref<8x128xf32, #tpu.memory_space<vmem>>, vector<8x128xf32>
      tpu.vector_store %arg7[%c0_11, %c0_12], %12 {strides = array<i32>} : memref<8x128xf32, #tpu.memory_space<vmem>>, vector<8x128xf32>,
    } else {
    }
    %c0 = arith.constant 0 : index
    %c0_1 = arith.constant 0 : index
    %3 = vector.load %arg4[%c0, %c0_1] : memref<32x128xf32, #tpu.memory_space<vmem>>, vector<32x128xf32>
    %c0_2 = arith.constant 0 : index
    %c0_3 = arith.constant 0 : index
    %4 = vector.load %arg7[%c0_2, %c0_3] : memref<8x128xf32, #tpu.memory_space<vmem>>, vector<8x128xf32>
    %c0_4 = arith.constant 0 : index
    %c0_5 = arith.constant 0 : index
    %5 = vector.load %arg3[%c0_4, %c0_5] : memref<8x32xf32, #tpu.memory_space<vmem>>, vector<8x32xf32>
    %cst = arith.constant dense<0.000000e+00> : vector<8x128xf32>
    %6 = tpu.matmul %5, %3, %cst {dimension_numbers = #tpu.dot_dimension_numbers<[1], [0], [0], [1], [0, 0, 1, 1], [], []>} : vector<8x32xf32>, vector<32x128xf32>, vector<8x128xf32> -> vector<8x128xf32>
    %7 = arith.addf %4, %6 : vector<8x128xf32>
    %c0_6 = arith.constant 0 : index
    %c0_7 = arith.constant 0 : index
    %8 = vector.load %arg7[%c0_6, %c0_7] : memref<8x128xf32, #tpu.memory_space<vmem>>, vector<8x128xf32>
    tpu.vector_store %arg7[%c0_6, %c0_7], %7 {strides = array<i32>} : memref<8x128xf32, #tpu.memory_space<vmem>>, vector<8x128xf32>,
    %c0_i32_8 = arith.constant 0 : i32
    %9 = arith.cmpi eq, %arg2, %c0_i32_8 : i32
    %10 = arith.extui %9 : i1 to i32
    %c0_i32_9 = arith.constant 0 : i32
    %11 = arith.cmpi ne, %10, %c0_i32_9 : i32
    scf.if %11 {
      %c0_10 = arith.constant 0 : index
      %c0_11 = arith.constant 0 : index
      %12 = vector.load %arg7[%c0_10, %c0_11] : memref<8x128xf32, #tpu.memory_space<vmem>>, vector<8x128xf32>
      %c0_12 = arith.constant 0 : index
      %c0_13 = arith.constant 0 : index
      %13 = vector.load %arg5[%c0_12, %c0_13] : memref<128x128xf32, #tpu.memory_space<vmem>>, vector<128x128xf32>
      %cst_14 = arith.constant dense<0.000000e+00> : vector<8x128xf32>
      %14 = tpu.matmul %12, %13, %cst_14 {dimension_numbers = #tpu.dot_dimension_numbers<[1], [0], [0], [1], [0, 0, 1, 1], [], []>} : vector<8x128xf32>, vector<128x128xf32>, vector<8x128xf32> -> vector<8x128xf32>
      %c0_15 = arith.constant 0 : index
      %c0_16 = arith.constant 0 : index
      %15 = vector.load %arg6[%c0_15, %c0_16] : memref<8x128xf32, #tpu.memory_space<vmem>>, vector<8x128xf32>
      tpu.vector_store %arg6[%c0_15, %c0_16], %14 {strides = array<i32>} : memref<8x128xf32, #tpu.memory_space<vmem>>, vector<8x128xf32>,
    } else {
    }
    return
  }
  func.func @transform_0(%arg0: i32, %arg1: i32, %arg2: i32) -> (i32, i32) {
    %c0_i32 = arith.constant 0 : i32
    return %arg0, %arg2 : i32, i32
  }
  func.func @transform_1(%arg0: i32, %arg1: i32, %arg2: i32) -> (i32, i32) {
    %c0_i32 = arith.constant 0 : i32
    %c0_i32_0 = arith.constant 0 : i32
    %c0_i32_1 = arith.constant 0 : i32
    return %c0_i32, %c0_i32_0 : i32, i32
  }
  func.func @transform_2(%arg0: i32, %arg1: i32, %arg2: i32) -> (i32, i32) {
    %c0_i32 = arith.constant 0 : i32
    %c0_i32_0 = arith.constant 0 : i32
    return %c0_i32, %arg1 : i32, i32
  }
  func.func @transform_3(%arg0: i32, %arg1: i32, %arg2: i32) -> (i32, i32) {
    %c0_i32 = arith.constant 0 : i32
    return %arg0, %arg1 : i32, i32
  }
}

</mosaic_0001>

<bundles_post_ra>
// kernel: tpu_custom_call.1
= control target key start
LH: loop header
LB: loop body
LE: loop exit
PB: predicated region body
PF: predicated region fallthrough
CT: control target
= control target key end

     0   :  { %8 = vsyncpa [#allocation4], 0  ;;  %s1207_s0 = inlined_call_operand.hbm [shape: f32[16,32], index: 0, kind: input, shape index: {}]   ;;  %s1208_s1 = inlined_call_operand.hbm [shape: f32[32,128], index: 1, kind: input, shape index: {}]   ;;  %s1209_s2 = inlined_call_operand.hbm [shape: f32[128,128], index: 2, kind: input, shape index: {}]   ;;  %s1210_s3 = inlined_call_operand.hbm [shape: f32[16,128], index: 3, kind: output, shape index: {}]  }
   0x1   :  { %10 = vsyncpa [#allocation4 + $0x1], 0 }
   0x2   :  { %11 = vsyncpa [#allocation7], 0 }
   0x3   :  { %12 = vsyncpa [#allocation5], 0 }
   0x4   :  { %14 = vsyncpa [#allocation5 + $0x1], 0  ;;  %s950_s12 = smov 0   ;;  %s952_s13 = smov 0  }
   0x5   :  { %s954_s14 = smov 0   ;;  %s956_s15 = smov 0  }
   0x6   :  { %s958_s16 = smov 0   ;;  %s960_s17 = smov 0  }
   0x7 LB: > { %s543_s18 = sadd.s32 4294967295, %s919_s17   ;;  %s544_s19 = sadd.s32 4294967294, %s919_s17   ;;  %s919_s17 = sphi %s960_s17, %s20_s17   ;;  %s915_s16 = sphi %s958_s16, %s1232_s16   ;;  %s911_s15 = sphi %s956_s15, %s1231_s15   ;;  %s907_s14 = sphi %s954_s14, %s1230_s14   ;;  %s903_s13 = sphi %s952_s13, %s1229_s13   ;;  %s899_s12 = sphi %s950_s12, %s1228_s12  }
   0x8   : > { %p61_p0 = scmp.ne.s32.totalorder %s903_s13, %s899_s12  ;;  %p984_p1 = scmp.eq.s32.totalorder %s543_s18, 0 }
   0x9   : > { %p988_p2 = scmp.eq.s32.totalorder %s543_s18, 1  ;;  %p140_p3 = scmp.eq.s32.totalorder %s544_s19, 1 }
   0xa   : > { %s1215_s20 = scalar_select %p984_p1, 1, 0 }
   0xb   : > { %p994_p4 = por %p984_p1, %p61_p0  ;;  %p545_p5 = scmp.ge.s32.totalorder %s919_s17, 1 }
   0xc   : > { %p999_p6 = por %p140_p3, %p61_p0  ;;  %p147_p7 = scmp.lt.s32.totalorder %s919_s17, 3 }
   0xd   : > { %s1217_s22 = scalar_select %p994_p4, 1, 0 }
   0xe   : > { %s1218_s23 = scalar_select %p999_p6, 1, 0 }
   0xf   : > { %p1004_p8 = pnand %p545_p5, %p147_p7  ;;  %s921_s25 = smov [#allocation6]  }
  0x10   : > { %s159_s26 = sshll.u32 %s921_s25, 4  ;;  %s922_s28 = smov [#allocation8]   ;;  %s1008_s26 = int_to_ptr.vmem [resolvable:$true] %s159_s26 }
  0x11   : > { %p671_p9 = pneg %p1004_p8  ;;  %s174_s29 = sshll.u32 %s922_s28, 4  ;;  %s1019_s29 = int_to_ptr.vmem [resolvable:$true] %s174_s29 }
  0x12   : > { %s747_s5 = scalar_lea.hbm %s1208_s1, 512 }
  0x13   : > { %p1015_p11 = pnand %p671_p9, %p984_p1  ;;  %p748_p12 = scmp.ne.s32.totalorder %s1208_s1, %s747_s5 }
  0x14   : > { %p754_p5 = scmp.lt.u32.totalorder %s747_s5, %s1208_s1 }
  0x15   : > { %p749_p13 = pneg %p1015_p11 }
  0x17   : > { %p750_p0 = pnand %p749_p13, %p748_p12 }
  0x19   : > { %p751_p3 = pneg %p750_p0 }
  0x1b   : > { %p756_p7 = pnand %p754_p5, %p751_p3 }
  0x1d   : > { %759 = shalt.err (!%p756_p7)
}
  0x1e   : > { %s760_s10 = scalar_lea.vmem %s1008_s26, 512  ;;  %p768_p1 = scmp.lt.s32.totalorder %s1008_s26, %s1008_s26 }
  0x1f   : > { %p761_p9 = scmp.ne.s32.totalorder %s1008_s26, %s760_s10  ;;  %p769_p12 = scmp.lt.s32.totalorder %s760_s10, %s760_s10 }
  0x21   : > { %p763_p10 = pnand %p761_p9, %p749_p13  ;;  %p770_p0 = por %p769_p12, %p768_p1 }
  0x23   : > { %p764_p6 = pneg %p763_p10 }
  0x25   : > { %p771_p4 = pnand %p770_p0, %p764_p6 }
  0x27   : > { %774 = shalt.err (!%p771_p4)
}
  0x28   : > { %s923_s11 = smov 128   ;;  %s924_s18 = smov 8  }
  0x29   : > { %674 = dma.hbm_to_vmem [thread:$0]  (!%p1015_p11), %s1208_s1, 512, %s1008_s26, [#allocation7], %s923_s11, %s923_s11, %s924_s18  }
  0x2a   : > { %s775_s4 = scalar_lea.hbm %s1209_s2, 2048 }
  0x2b   : > { %p776_p1 = scmp.ne.s32.totalorder %s1209_s2, %s775_s4  ;;  %p782_p10 = scmp.lt.u32.totalorder %s775_s4, %s1209_s2 }
  0x2d   : > { %p778_p4 = pnand %p776_p1, %p749_p13 }
  0x2f   : > { %p779_p6 = pneg %p778_p4 }
  0x31   : > { %p784_p3 = pnand %p782_p10, %p779_p6 }
  0x33   : > { %787 = shalt.err (!%p784_p3)
}
  0x34   : > { %s788_s26 = scalar_lea.vmem %s1019_s29, 2048  ;;  %p796_p12 = scmp.lt.s32.totalorder %s1019_s29, %s1019_s29 }
  0x35   : > { %p789_p5 = scmp.ne.s32.totalorder %s1019_s29, %s788_s26  ;;  %p797_p0 = scmp.lt.s32.totalorder %s788_s26, %s788_s26 }
  0x37   : > { %p791_p7 = pnand %p789_p5, %p749_p13  ;;  %p798_p1 = por %p797_p0, %p796_p12 }
  0x39   : > { %p792_p9 = pneg %p791_p7 }
  0x3b   : > { %p799_p4 = pnand %p798_p1, %p792_p9 }
  0x3d   : > { %802 = shalt.err (!%p799_p4)
}
  0x3e   : > { %677 = dma.hbm_to_vmem [thread:$0]  (!%p1015_p11), %s1209_s2, 2048, %s1019_s29, [#allocation7], %s923_s11, %s923_s11, %s924_s18  }
  0x3f   : > { %s39_s19 = sadd.s32 1, %s915_s16  ;;  %s48_s25 = sadd.s32 1, %s907_s14 }
  0x40   : > { %p41_p13 = scmp.ge.s32.totalorder %s39_s19, 2  ;;  %p55_p6 = scmp.ne.s32.totalorder %s907_s14, %s903_s13 }
  0x41   : > { %p56_p10 = scmp.eq.s32.totalorder %s919_s17, 0  ;;  %p688_p3 = scmp.lt.s32.totalorder %s919_s17, 2 }
  0x42   : > { %s1234_s19 = smov (%p41_p13, %s39_s19), 0  ;;  %p1083_p7 = por %p988_p2, %p55_p6 }
  0x43   : > { %p57_p5 = por %p56_p10, %p55_p6  ;;  %s43_s28 = ssub.s32 %s915_s16, %s1234_s19 }
  0x44   : > { %s1221_s27 = scalar_select %p1083_p7, 1, 0 }
  0x45   : > { %s188_s30 = sand.u32 1, %s907_s14   ;;  %p46_p9 = scmp.eq.s32.totalorder %s43_s28, 0 }
  0x46   : > { %s549_s29 = sshll.u32 %s188_s30, 3  ;;  %s550_s11 = sshll.u32 %s915_s16, 7 }
  0x47   : > { %s1092_s18 = scalar_select %p46_p9, %s907_s14, %s48_s25  }
  0x48   : > { %s1097_s6 = scalar_lea.hbm %s1207_s0, %s550_s11  ;;  %s192_s21 = scalar_lea.vmem [#allocation3], %s549_s29 }
  0x49   : > { %s200_s7 = sshll.u32 %s192_s21, 4  ;;  %p1101_p2 = pnand %p688_p3, %p57_p5  ;;  %s1105_s7 = int_to_ptr.vmem [resolvable:$true] %s200_s7 }
  0x4a   : > { %s189_s26 = scalar_lea.sflag [#allocation4], %s188_s30  ;;  %s803_s9 = scalar_lea.hbm %s1097_s6, 128 }
  0x4b   : > { %p804_p11 = scmp.ne.s32.totalorder %s1097_s6, %s803_s9  ;;  %p805_p12 = pneg %p1101_p2 }
  0x4c   : > { %s808_s28 = scalar_lea.hbm %s1207_s0, 256  ;;  %p809_p4 = scmp.lt.u32.totalorder %s1097_s6, %s1207_s0 }
  0x4d   : > { %p806_p0 = pnand %p805_p12, %p804_p11  ;;  %p810_p13 = scmp.lt.u32.totalorder %s808_s28, %s803_s9 }
  0x4e   : > { %p812_p10 = scmp.lt.u32.totalorder %s803_s9, %s1097_s6 }
  0x4f   : > { %p807_p1 = pneg %p806_p0  ;;  %p811_p6 = por %p810_p13, %p809_p4 }
  0x51   : > { %p813_p3 = por %p812_p10, %p811_p6 }
  0x53   : > { %p814_p5 = pnand %p813_p3, %p807_p1 }
  0x55   : > { %817 = shalt.err (!%p814_p5)
}
  0x56   : > { %s818_s30 = scalar_lea.vmem %s1105_s7, 128  ;;  %s925_s4 = smov [#allocation3]  }
  0x57   : > { %p819_p9 = scmp.ne.s32.totalorder %s1105_s7, %s818_s30  ;;  %s823_s5 = sshll.u32 %s925_s4, 4  ;;  %s824_s5 = int_to_ptr.vmem [resolvable:$false] %s823_s5 }
  0x58   : > { %s825_s21 = scalar_lea.vmem %s824_s5, 256  ;;  %p826_p7 = scmp.lt.s32.totalorder %s1105_s7, %s824_s5 }
  0x59   : > { %p821_p11 = pnand %p819_p9, %p805_p12  ;;  %p827_p4 = scmp.lt.s32.totalorder %s825_s21, %s818_s30 }
  0x5b   : > { %p822_p0 = pneg %p821_p11  ;;  %p828_p13 = por %p827_p4, %p826_p7 }
  0x5d   : > { %p829_p6 = pnand %p828_p13, %p822_p0 }
  0x5f   : > { %832 = shalt.err (!%p829_p6)
}
  0x60   : > { %681 = dma.hbm_to_vmem [thread:$0]  (!%p1101_p2), %s1097_s6, 128, %s1105_s7, %s189_s26  }
  0x61   : > { %209 = sbr.rel (%p1004_p8) target bundleno = 557 (0x22d), region = 32  ;;  %s1135_s9 = sand.u32 (!%p1004_p8), 1, %s903_s13  }
  0x62   : > { %s552_s10 = sshll.u32 (!%p1004_p8), %s1135_s9, 3  ;;  %s212_s25 = scalar_lea.sflag (!%p1004_p8), [#allocation4], %s1135_s9 }
  0x63   : > { %s1141_s28 = scalar_lea.vmem (!%p1004_p8), [#allocation3], %s552_s10  ;;  %p1223_p7 = scmp.ne.s32.totalorder (!%p1004_p8), %s1217_s22, 0 }
  0x68   : > { %886 = dma.done.wait (%p1223_p7), %s212_s25, 128  }
  0x69   : > { %888 = vsyncadd (%p1223_p7), %s212_s25, 4294967168  ;;  %p1224_p2 = scmp.ne.s32.totalorder %s1215_s20, 0 }
  0x6b   : > { %890 = dma.done.wait (%p1224_p2), [#allocation7], 2560  }
  0x6c   : > { %892 = vsyncadd (%p1224_p2), [#allocation7], 4294964736  ;;  %v926_v0 = vmov 0.0|0.0   ;;  %vm927_vm0 = vmmov 0   ;;  %v928_v1 = vmov 0.0   ;;  %v251_v2 = vld [vmem:[#allocation6] sm:$0xff] }
  0x6d   : > { %629 = vmatprep.subr.bf16.mxu0 %v926_v0  ;;  %591 = vmatprep.mubr.msk.f32.mxu0 %vm927_vm0, %v928_v1  ;;  %v252_v3 = vld [vmem:[#allocation6 + $0x8] sm:$0xff]  ;;  %v253_v4 = vld [vmem:[#allocation6 + $0x10] sm:$0xff]  ;;  %v254_v6 = vld [vmem:[#allocation6 + $0x18] sm:$0xff]  ;;  %vm257_vm1 = vcmask 261120   ;;  %s245_s20 = scalar_lea.vmem [#allocation9], %s552_s10  ;;  %s558_s24 = sshll.u32 %s911_s15, 7 }
  0x6e   : > { %635 = vmatprep.subr.bf16.mxu1 %v926_v0  ;;  %626 = vmatprep.mubr.msk.f32.mxu1 %vm927_vm0, %v928_v1  ;;  %v630_v5 = vpack.c.bf16 %v252_v3, %v251_v2  ;;  %v337_v7 = vld [vmem:[#allocation8] sm:$0xff]  ;;  %v338_v8 = vld [vmem:[#allocation8 + $0x8] sm:$0xff]  ;;  %v339_v9 = vld [vmem:[#allocation8 + $0x10] sm:$0xff]  ;;  %v633_v11 = vpack.c.bf16 %v254_v6, %v253_v4  ;;  %s439_s22 = sshll.u32 %s245_s20, 4  ;;  %s1160_s8 = scalar_lea.hbm %s1210_s3, %s558_s24  ;;  %s1155_s22 = int_to_ptr.vmem [resolvable:$true] %s439_s22 }
  0x6f   : > { %v340_v10 = vld [vmem:[#allocation8 + $0x18] sm:$0xff]  ;;  %v636_v12 = vpack.c.bf16 %v338_v8, %v337_v7  ;;  %v341_v14 = vld [vmem:[#allocation8 + $0x20] sm:$0xff]  ;;  %v342_v15 = vld [vmem:[#allocation8 + $0x28] sm:$0xff]  ;;  %s425_s26 = scalar_lea.sflag [#allocation5], %s1135_s9  ;;  %s833_s29 = scalar_lea.vmem %s1155_s22, 128 }
  0x70   : > { %631 = vmatpush3.bf16.msra.mxu0 %v630_v5  ;;  %v639_v13 = vpack.c.bf16 %v340_v10, %v339_v9  ;;  %v256_v16 = vld [vmem:[%s1141_s28] sm:$0xff]  ;;  %v642_v17 = vpack.c.bf16 %v342_v15, %v341_v14  ;;  %v345_v21 = vld [vmem:[#allocation8 + $0x40] sm:$0xff]  ;;  %v346_v22 = vld [vmem:[#allocation8 + $0x48] sm:$0xff]  ;;  %p834_p8 = scmp.ne.s32.totalorder %s1155_s22, %s833_s29  ;;  %p1225_p12 = scmp.ne.s32.totalorder %s1221_s27, 0 }
  0x71   : > { %632 = vmatprep.subr.bf16.mxu0 %v926_v0  ;;  %637 = vmatpush3.bf16.msra.mxu1 %v636_v12  ;;  %v343_v18 = vld [vmem:[#allocation8 + $0x30] sm:$0xff]  ;;  %v344_v19 = vld [vmem:[#allocation8 + $0x38] sm:$0xff]  ;;  %v648_v23 = vpack.c.bf16 %v346_v22, %v345_v21  ;;  %v349_v27 = vld [vmem:[#allocation8 + $0x60] sm:$0xff]  ;;  %s929_s15 = smov [#allocation9]  }
  0x72   : > { %638 = vmatprep.subr.bf16.mxu1 %v926_v0  ;;  %v645_v20 = vpack.c.bf16 %v344_v19, %v343_v18  ;;  %v347_v24 = vld [vmem:[#allocation8 + $0x50] sm:$0xff]  ;;  %v348_v25 = vld [vmem:[#allocation8 + $0x58] sm:$0xff]  ;;  %v350_v28 = vld [vmem:[#allocation8 + $0x68] sm:$0xff]  ;;  %p835_p1 = pnand %p834_p8, %p1225_p12  ;;  %s837_s11 = sshll.u32 %s929_s15, 4  ;;  %s838_s11 = int_to_ptr.vmem [resolvable:$false] %s837_s11 }
  0x73   : > { %v651_v26 = vpack.c.bf16 %v348_v25, %v347_v24  ;;  %v654_v29 = vpack.c.bf16 %v350_v28, %v349_v27  ;;  %v351_v30 = vld [vmem:[#allocation8 + $0x70] sm:$0xff]  ;;  %v352_v31 = vld [vmem:[#allocation8 + $0x78] sm:$0xff]  ;;  %s839_s30 = scalar_lea.vmem %s838_s11, 256  ;;  %p840_p3 = scmp.lt.s32.totalorder %s1155_s22, %s838_s11 }
  0x74   : > { %634 = vmatpush3.bf16.msra.mxu0 %v633_v11  ;;  %v657_v32 = vpack.c.bf16 %v352_v31, %v351_v30  ;;  %p836_p10 = pneg %p835_p1  ;;  %p841_p5 = scmp.lt.s32.totalorder %s839_s30, %s833_s29 }
  0x75   : > { %640 = vmatpush3.bf16.msra.mxu1 %v639_v13 }
  0x76   : > { %641 = vmatprep.subr.bf16.mxu1 %v926_v0  ;;  %p842_p9 = por %p841_p5, %p840_p3 }
  0x77   : > { %592 = vmatmul.mubr.msk.f32.vlgmr.msra.gmra.mrb[0].mxu0 %vm257_vm1, %v256_v16 }
  0x78   : > { %p843_p11 = pnand %p842_p9, %p836_p10 }
  0x79   : > { %643 = vmatpush3.bf16.msra.mxu1 %v642_v17 }
  0x7a   : > { %644 = vmatprep.subr.bf16.mxu1 %v926_v0 }
  0x7d   : > { %646 = vmatpush3.bf16.msra.mxu1 %v645_v20 }
  0x7e   : > { %647 = vmatprep.subr.bf16.mxu1 %v926_v0 }
  0x81   : > { %649 = vmatpush3.bf16.msra.mxu1 %v648_v23 }
  0x82   : > { %650 = vmatprep.subr.bf16.mxu1 %v926_v0 }
  0x85   : > { %652 = vmatpush3.bf16.msra.mxu1 %v651_v26 }
  0x86   : > { %653 = vmatprep.subr.bf16.mxu1 %v926_v0 }
  0x89   : > { %655 = vmatpush3.bf16.msra.mxu1 %v654_v29 }
  0x8a   : > { %656 = vmatprep.subr.bf16.mxu1 %v926_v0 }
  0x8d   : > { %658 = vmatpush3.bf16.msra.mxu1 %v657_v32 }
 0x14a   : > { %v327_v33 = vpop.f32.mrb[0].mxu0 }
 0x14b   : > { %v593_v34 = vpop.f32.mrb[1].mxu0  ;;  %627 = vmatmul.mubr.f32.vlgmr.msra.gmra.mrb[0].mxu1 %v327_v33 }
 0x21e   : > { %v419_v35 = vpop.f32.mrb[0].mxu1 }
 0x21f   : > { %423 = vst [vmem:[%s245_s20] sm:$0xff] %v419_v35  ;;  %v628_v36 = vpop.f32.mrb[1].mxu1 }
 0x220   : > { %846 = shalt.err (!%p843_p11)
}
 0x221   : > { %s847_s4 = scalar_lea.hbm %s1160_s8, 128  ;;  %s851_s9 = scalar_lea.hbm %s1210_s3, 256 }
 0x222   : > { %p848_p0 = scmp.ne.s32.totalorder %s1160_s8, %s847_s4  ;;  %p852_p6 = scmp.lt.u32.totalorder %s1160_s8, %s1210_s3 }
 0x223   : > { %p853_p7 = scmp.lt.u32.totalorder %s851_s9, %s847_s4  ;;  %p855_p8 = scmp.lt.u32.totalorder %s847_s4, %s1160_s8 }
 0x224   : > { %p849_p4 = pnand %p848_p0, %p1225_p12 }
 0x225   : > { %p854_p2 = por %p853_p7, %p852_p6 }
 0x226   : > { %p850_p13 = pneg %p849_p4 }
 0x227   : > { %p856_p1 = por %p855_p8, %p854_p2 }
 0x229   : > { %p857_p10 = pnand %p856_p1, %p850_p13 }
 0x22b   : > { %860 = shalt.err (!%p857_p10)
}
 0x22c   : > { %669 = dma.vmem_to_hbm [thread:$0]  (%p1225_p12), %s1155_s22, 128, %s1160_s8, %s425_s26  }
 0x22d PF: > { %s451_s28 = sand.u32 1, %s899_s12   ;;  %p1226_p3 = scmp.ne.s32.totalorder %s1218_s23, 0 }
 0x22e   : > { %p1227_p5 = scmp.ge.s32.totalorder %s919_s17, 2  ;;  %s452_s20 = scalar_lea.sflag [#allocation5], %s451_s28 }
 0x230   : > { %p683_p9 = pnand %p1227_p5, %p1226_p3 }
 0x232   : > { %894 = dma.done.wait (!%p683_p9), %s452_s20, 128  }
 0x233   : > { %896 = vsyncadd (!%p683_p9), %s452_s20, 4294967168  ;;  %s20_s17 = sadd.s32 1, %s919_s17   ;;  %s1228_s12 = smov %s903_s13 }
 0x234   : > { %p17_p11 = scmp.ge.s32.totalorder %s20_s17, 4   ;;  %s1229_s13 = smov %s907_s14 }
 0x235   : > { %s1230_s14 = smov %s1092_s18  ;;  %s1231_s15 = smov %s915_s16 }
 0x236   : > { %s1232_s16 = smov %s1234_s19  ;;  %19 = sbr.rel (!%p17_p11) target bundleno = 7 (0x7), region = 94 }
 0x23d   :  { %457 = vsyncpa [#allocation4], 1 }
 0x23e   :  { %459 = vsyncpa [#allocation4 + $0x1], 1 }
 0x23f   :  { %460 = vsyncpa [#allocation7], 1 }
 0x240   :  { %461 = vsyncpa [#allocation5], 1 }
 0x241   :  { %463 = vsyncpa [#allocation5 + $0x1], 1 }

// kernel: tpu_custom_call.1
= control target key start
LH: loop header
LB: loop body
LE: loop exit
PB: predicated region body
PF: predicated region fallthrough
CT: control target
= control target key end

     0   :  { %8 = vsyncpa [#allocation4], 0  ;;  %s1207_s0 = inlined_call_operand.hbm [shape: f32[16,32], index: 0, kind: input, shape index: {}]   ;;  %s1208_s1 = inlined_call_operand.hbm [shape: f32[32,128], index: 1, kind: input, shape index: {}]   ;;  %s1209_s2 = inlined_call_operand.hbm [shape: f32[128,128], index: 2, kind: input, shape index: {}]   ;;  %s1210_s3 = inlined_call_operand.hbm [shape: f32[16,128], index: 3, kind: output, shape index: {}]  }
   0x1   :  { %10 = vsyncpa [#allocation4 + $0x1], 0 }
   0x2   :  { %11 = vsyncpa [#allocation7], 0 }
   0x3   :  { %12 = vsyncpa [#allocation5], 0 }
   0x4   :  { %14 = vsyncpa [#allocation5 + $0x1], 0  ;;  %s950_s12 = smov 0   ;;  %s952_s13 = smov 0  }
   0x5   :  { %s954_s14 = smov 0   ;;  %s956_s15 = smov 0  }
   0x6   :  { %s958_s16 = smov 0   ;;  %s960_s17 = smov 0  }
   0x7 LB: > { %s543_s18 = sadd.s32 4294967295, %s919_s17   ;;  %s544_s19 = sadd.s32 4294967294, %s919_s17   ;;  %s919_s17 = sphi %s960_s17, %s20_s17   ;;  %s915_s16 = sphi %s958_s16, %s1232_s16   ;;  %s911_s15 = sphi %s956_s15, %s1231_s15   ;;  %s907_s14 = sphi %s954_s14, %s1230_s14   ;;  %s903_s13 = sphi %s952_s13, %s1229_s13   ;;  %s899_s12 = sphi %s950_s12, %s1228_s12  }
   0x8   : > { %p61_p0 = scmp.ne.s32.totalorder %s903_s13, %s899_s12  ;;  %p984_p1 = scmp.eq.s32.totalorder %s543_s18, 0 }
   0x9   : > { %p988_p2 = scmp.eq.s32.totalorder %s543_s18, 1  ;;  %p140_p3 = scmp.eq.s32.totalorder %s544_s19, 1 }
   0xa   : > { %s1215_s20 = scalar_select %p984_p1, 1, 0 }
   0xb   : > { %p994_p4 = por %p984_p1, %p61_p0  ;;  %p545_p5 = scmp.ge.s32.totalorder %s919_s17, 1 }
   0xc   : > { %p999_p6 = por %p140_p3, %p61_p0  ;;  %p147_p7 = scmp.lt.s32.totalorder %s919_s17, 3 }
   0xd   : > { %s1217_s22 = scalar_select %p994_p4, 1, 0 }
   0xe   : > { %s1218_s23 = scalar_select %p999_p6, 1, 0 }
   0xf   : > { %p1004_p8 = pnand %p545_p5, %p147_p7  ;;  %s921_s25 = smov [#allocation6]  }
  0x10   : > { %s159_s26 = sshll.u32 %s921_s25, 4  ;;  %s922_s28 = smov [#allocation8]   ;;  %s1008_s26 = int_to_ptr.vmem [resolvable:$true] %s159_s26 }
  0x11   : > { %p671_p9 = pneg %p1004_p8  ;;  %s174_s29 = sshll.u32 %s922_s28, 4  ;;  %s1019_s29 = int_to_ptr.vmem [resolvable:$true] %s174_s29 }
  0x12   : > { %s747_s5 = scalar_lea.hbm %s1208_s1, 512 }
  0x13   : > { %p1015_p11 = pnand %p671_p9, %p984_p1  ;;  %p748_p12 = scmp.ne.s32.totalorder %s1208_s1, %s747_s5 }
  0x14   : > { %p754_p5 = scmp.lt.u32.totalorder %s747_s5, %s1208_s1 }
  0x15   : > { %p749_p13 = pneg %p1015_p11 }
  0x17   : > { %p750_p0 = pnand %p749_p13, %p748_p12 }
  0x19   : > { %p751_p3 = pneg %p750_p0 }
  0x1b   : > { %p756_p7 = pnand %p754_p5, %p751_p3 }
  0x1d   : > { %759 = shalt.err (!%p756_p7)
}
  0x1e   : > { %s760_s10 = scalar_lea.vmem %s1008_s26, 512  ;;  %p768_p1 = scmp.lt.s32.totalorder %s1008_s26, %s1008_s26 }
  0x1f   : > { %p761_p9 = scmp.ne.s32.totalorder %s1008_s26, %s760_s10  ;;  %p769_p12 = scmp.lt.s32.totalorder %s760_s10, %s760_s10 }
  0x21   : > { %p763_p10 = pnand %p761_p9, %p749_p13  ;;  %p770_p0 = por %p769_p12, %p768_p1 }
  0x23   : > { %p764_p6 = pneg %p763_p10 }
  0x25   : > { %p771_p4 = pnand %p770_p0, %p764_p6 }
  0x27   : > { %774 = shalt.err (!%p771_p4)
}
  0x28   : > { %s923_s11 = smov 128   ;;  %s924_s18 = smov 8  }
  0x29   : > { %674 = dma.hbm_to_vmem [thread:$0]  (!%p1015_p11), %s1208_s1, 512, %s1008_s26, [#allocation7], %s923_s11, %s923_s11, %s924_s18  }
  0x2a   : > { %s775_s4 = scalar_lea.hbm %s1209_s2, 2048 }
  0x2b   : > { %p776_p1 = scmp.ne.s32.totalorder %s1209_s2, %s775_s4  ;;  %p782_p10 = scmp.lt.u32.totalorder %s775_s4, %s1209_s2 }
  0x2d   : > { %p778_p4 = pnand %p776_p1, %p749_p13 }
  0x2f   : > { %p779_p6 = pneg %p778_p4 }
  0x31   : > { %p784_p3 = pnand %p782_p10, %p779_p6 }
  0x33   : > { %787 = shalt.err (!%p784_p3)
}
  0x34   : > { %s788_s26 = scalar_lea.vmem %s1019_s29, 2048  ;;  %p796_p12 = scmp.lt.s32.totalorder %s1019_s29, %s1019_s29 }
  0x35   : > { %p789_p5 = scmp.ne.s32.totalorder %s1019_s29, %s788_s26  ;;  %p797_p0 = scmp.lt.s32.totalorder %s788_s26, %s788_s26 }
  0x37   : > { %p791_p7 = pnand %p789_p5, %p749_p13  ;;  %p798_p1 = por %p797_p0, %p796_p12 }
  0x39   : > { %p792_p9 = pneg %p791_p7 }
  0x3b   : > { %p799_p4 = pnand %p798_p1, %p792_p9 }
  0x3d   : > { %802 = shalt.err (!%p799_p4)
}
  0x3e   : > { %677 = dma.hbm_to_vmem [thread:$0]  (!%p1015_p11), %s1209_s2, 2048, %s1019_s29, [#allocation7], %s923_s11, %s923_s11, %s924_s18  }
  0x3f   : > { %s39_s19 = sadd.s32 1, %s915_s16  ;;  %s48_s25 = sadd.s32 1, %s907_s14 }
  0x40   : > { %p41_p13 = scmp.ge.s32.totalorder %s39_s19, 2  ;;  %p55_p6 = scmp.ne.s32.totalorder %s907_s14, %s903_s13 }
  0x41   : > { %p56_p10 = scmp.eq.s32.totalorder %s919_s17, 0  ;;  %p688_p3 = scmp.lt.s32.totalorder %s919_s17, 2 }
  0x42   : > { %s1234_s19 = smov (%p41_p13, %s39_s19), 0  ;;  %p1083_p7 = por %p988_p2, %p55_p6 }
  0x43   : > { %p57_p5 = por %p56_p10, %p55_p6  ;;  %s43_s28 = ssub.s32 %s915_s16, %s1234_s19 }
  0x44   : > { %s1221_s27 = scalar_select %p1083_p7, 1, 0 }
  0x45   : > { %s188_s30 = sand.u32 1, %s907_s14   ;;  %p46_p9 = scmp.eq.s32.totalorder %s43_s28, 0 }
  0x46   : > { %s549_s29 = sshll.u32 %s188_s30, 3  ;;  %s550_s11 = sshll.u32 %s915_s16, 7 }
  0x47   : > { %s1092_s18 = scalar_select %p46_p9, %s907_s14, %s48_s25  }
  0x48   : > { %s1097_s6 = scalar_lea.hbm %s1207_s0, %s550_s11  ;;  %s192_s21 = scalar_lea.vmem [#allocation3], %s549_s29 }
  0x49   : > { %s200_s7 = sshll.u32 %s192_s21, 4  ;;  %p1101_p2 = pnand %p688_p3, %p57_p5  ;;  %s1105_s7 = int_to_ptr.vmem [resolvable:$true] %s200_s7 }
  0x4a   : > { %s189_s26 = scalar_lea.sflag [#allocation4], %s188_s30  ;;  %s803_s9 = scalar_lea.hbm %s1097_s6, 128 }
  0x4b   : > { %p804_p11 = scmp.ne.s32.totalorder %s1097_s6, %s803_s9  ;;  %p805_p12 = pneg %p1101_p2 }
  0x4c   : > { %s808_s28 = scalar_lea.hbm %s1207_s0, 256  ;;  %p809_p4 = scmp.lt.u32.totalorder %s1097_s6, %s1207_s0 }
  0x4d   : > { %p806_p0 = pnand %p805_p12, %p804_p11  ;;  %p810_p13 = scmp.lt.u32.totalorder %s808_s28, %s803_s9 }
  0x4e   : > { %p812_p10 = scmp.lt.u32.totalorder %s803_s9, %s1097_s6 }
  0x4f   : > { %p807_p1 = pneg %p806_p0  ;;  %p811_p6 = por %p810_p13, %p809_p4 }
  0x51   : > { %p813_p3 = por %p812_p10, %p811_p6 }
  0x53   : > { %p814_p5 = pnand %p813_p3, %p807_p1 }
  0x55   : > { %817 = shalt.err (!%p814_p5)
}
  0x56   : > { %s818_s30 = scalar_lea.vmem %s1105_s7, 128  ;;  %s925_s4 = smov [#allocation3]  }
  0x57   : > { %p819_p9 = scmp.ne.s32.totalorder %s1105_s7, %s818_s30  ;;  %s823_s5 = sshll.u32 %s925_s4, 4  ;;  %s824_s5 = int_to_ptr.vmem [resolvable:$false] %s823_s5 }
  0x58   : > { %s825_s21 = scalar_lea.vmem %s824_s5, 256  ;;  %p826_p7 = scmp.lt.s32.totalorder %s1105_s7, %s824_s5 }
  0x59   : > { %p821_p11 = pnand %p819_p9, %p805_p12  ;;  %p827_p4 = scmp.lt.s32.totalorder %s825_s21, %s818_s30 }
  0x5b   : > { %p822_p0 = pneg %p821_p11  ;;  %p828_p13 = por %p827_p4, %p826_p7 }
  0x5d   : > { %p829_p6 = pnand %p828_p13, %p822_p0 }
  0x5f   : > { %832 = shalt.err (!%p829_p6)
}
  0x60   : > { %681 = dma.hbm_to_vmem [thread:$0]  (!%p1101_p2), %s1097_s6, 128, %s1105_s7, %s189_s26  }
  0x61   : > { %209 = sbr.rel (%p1004_p8) target bundleno = 557 (0x22d), region = 32  ;;  %s1135_s9 = sand.u32 (!%p1004_p8), 1, %s903_s13  }
  0x62   : > { %s552_s10 = sshll.u32 (!%p1004_p8), %s1135_s9, 3  ;;  %s212_s25 = scalar_lea.sflag (!%p1004_p8), [#allocation4], %s1135_s9 }
  0x63   : > { %s1141_s28 = scalar_lea.vmem (!%p1004_p8), [#allocation3], %s552_s10  ;;  %p1223_p7 = scmp.ne.s32.totalorder (!%p1004_p8), %s1217_s22, 0 }
  0x68   : > { %886 = dma.done.wait (%p1223_p7), %s212_s25, 128  }
  0x69   : > { %888 = vsyncadd (%p1223_p7), %s212_s25, 4294967168  ;;  %p1224_p2 = scmp.ne.s32.totalorder %s1215_s20, 0 }
  0x6b   : > { %890 = dma.done.wait (%p1224_p2), [#allocation7], 2560  }
  0x6c   : > { %892 = vsyncadd (%p1224_p2), [#allocation7], 4294964736  ;;  %v926_v0 = vmov 0.0|0.0   ;;  %vm927_vm0 = vmmov 0   ;;  %v928_v1 = vmov 0.0   ;;  %v251_v2 = vld [vmem:[#allocation6] sm:$0xff] }
  0x6d   : > { %629 = vmatprep.subr.bf16.mxu0 %v926_v0  ;;  %591 = vmatprep.mubr.msk.f32.mxu0 %vm927_vm0, %v928_v1  ;;  %v252_v3 = vld [vmem:[#allocation6 + $0x8] sm:$0xff]  ;;  %v253_v4 = vld [vmem:[#allocation6 + $0x10] sm:$0xff]  ;;  %v254_v6 = vld [vmem:[#allocation6 + $0x18] sm:$0xff]  ;;  %vm257_vm1 = vcmask 261120   ;;  %s245_s20 = scalar_lea.vmem [#allocation9], %s552_s10  ;;  %s558_s24 = sshll.u32 %s911_s15, 7 }
  0x6e   : > { %635 = vmatprep.subr.bf16.mxu1 %v926_v0  ;;  %626 = vmatprep.mubr.msk.f32.mxu1 %vm927_vm0, %v928_v1  ;;  %v630_v5 = vpack.c.bf16 %v252_v3, %v251_v2  ;;  %v337_v7 = vld [vmem:[#allocation8] sm:$0xff]  ;;  %v338_v8 = vld [vmem:[#allocation8 + $0x8] sm:$0xff]  ;;  %v339_v9 = vld [vmem:[#allocation8 + $0x10] sm:$0xff]  ;;  %v633_v11 = vpack.c.bf16 %v254_v6, %v253_v4  ;;  %s439_s22 = sshll.u32 %s245_s20, 4  ;;  %s1160_s8 = scalar_lea.hbm %s1210_s3, %s558_s24  ;;  %s1155_s22 = int_to_ptr.vmem [resolvable:$true] %s439_s22 }
  0x6f   : > { %v340_v10 = vld [vmem:[#allocation8 + $0x18] sm:$0xff]  ;;  %v636_v12 = vpack.c.bf16 %v338_v8, %v337_v7  ;;  %v341_v14 = vld [vmem:[#allocation8 + $0x20] sm:$0xff]  ;;  %v342_v15 = vld [vmem:[#allocation8 + $0x28] sm:$0xff]  ;;  %s425_s26 = scalar_lea.sflag [#allocation5], %s1135_s9  ;;  %s833_s29 = scalar_lea.vmem %s1155_s22, 128 }
  0x70   : > { %631 = vmatpush3.bf16.msra.mxu0 %v630_v5  ;;  %v639_v13 = vpack.c.bf16 %v340_v10, %v339_v9  ;;  %v256_v16 = vld [vmem:[%s1141_s28] sm:$0xff]  ;;  %v642_v17 = vpack.c.bf16 %v342_v15, %v341_v14  ;;  %v345_v21 = vld [vmem:[#allocation8 + $0x40] sm:$0xff]  ;;  %v346_v22 = vld [vmem:[#allocation8 + $0x48] sm:$0xff]  ;;  %p834_p8 = scmp.ne.s32.totalorder %s1155_s22, %s833_s29  ;;  %p1225_p12 = scmp.ne.s32.totalorder %s1221_s27, 0 }
  0x71   : > { %632 = vmatprep.subr.bf16.mxu0 %v926_v0  ;;  %637 = vmatpush3.bf16.msra.mxu1 %v636_v12  ;;  %v343_v18 = vld [vmem:[#allocation8 + $0x30] sm:$0xff]  ;;  %v344_v19 = vld [vmem:[#allocation8 + $0x38] sm:$0xff]  ;;  %v648_v23 = vpack.c.bf16 %v346_v22, %v345_v21  ;;  %v349_v27 = vld [vmem:[#allocation8 + $0x60] sm:$0xff]  ;;  %s929_s15 = smov [#allocation9]  }
  0x72   : > { %638 = vmatprep.subr.bf16.mxu1 %v926_v0  ;;  %v645_v20 = vpack.c.bf16 %v344_v19, %v343_v18  ;;  %v347_v24 = vld [vmem:[#allocation8 + $0x50] sm:$0xff]  ;;  %v348_v25 = vld [vmem:[#allocation8 + $0x58] sm:$0xff]  ;;  %v350_v28 = vld [vmem:[#allocation8 + $0x68] sm:$0xff]  ;;  %p835_p1 = pnand %p834_p8, %p1225_p12  ;;  %s837_s11 = sshll.u32 %s929_s15, 4  ;;  %s838_s11 = int_to_ptr.vmem [resolvable:$false] %s837_s11 }
  0x73   : > { %v651_v26 = vpack.c.bf16 %v348_v25, %v347_v24  ;;  %v654_v29 = vpack.c.bf16 %v350_v28, %v349_v27  ;;  %v351_v30 = vld [vmem:[#allocation8 + $0x70] sm:$0xff]  ;;  %v352_v31 = vld [vmem:[#allocation8 + $0x78] sm:$0xff]  ;;  %s839_s30 = scalar_lea.vmem %s838_s11, 256  ;;  %p840_p3 = scmp.lt.s32.totalorder %s1155_s22, %s838_s11 }
  0x74   : > { %634 = vmatpush3.bf16.msra.mxu0 %v633_v11  ;;  %v657_v32 = vpack.c.bf16 %v352_v31, %v351_v30  ;;  %p836_p10 = pneg %p835_p1  ;;  %p841_p5 = scmp.lt.s32.totalorder %s839_s30, %s833_s29 }
  0x75   : > { %640 = vmatpush3.bf16.msra.mxu1 %v639_v13 }
  0x76   : > { %641 = vmatprep.subr.bf16.mxu1 %v926_v0  ;;  %p842_p9 = por %p841_p5, %p840_p3 }
  0x77   : > { %592 = vmatmul.mubr.msk.f32.vlgmr.msra.gmra.mrb[0].mxu0 %vm257_vm1, %v256_v16 }
  0x78   : > { %p843_p11 = pnand %p842_p9, %p836_p10 }
  0x79   : > { %643 = vmatpush3.bf16.msra.mxu1 %v642_v17 }
  0x7a   : > { %644 = vmatprep.subr.bf16.mxu1 %v926_v0 }
  0x7d   : > { %646 = vmatpush3.bf16.msra.mxu1 %v645_v20 }
  0x7e   : > { %647 = vmatprep.subr.bf16.mxu1 %v926_v0 }
  0x81   : > { %649 = vmatpush3.bf16.msra.mxu1 %v648_v23 }
  0x82   : > { %650 = vmatprep.subr.bf16.mxu1 %v926_v0 }
  0x85   : > { %652 = vmatpush3.bf16.msra.mxu1 %v651_v26 }
  0x86   : > { %653 = vmatprep.subr.bf16.mxu1 %v926_v0 }
  0x89   : > { %655 = vmatpush3.bf16.msra.mxu1 %v654_v29 }
  0x8a   : > { %656 = vmatprep.subr.bf16.mxu1 %v926_v0 }
  0x8d   : > { %658 = vmatpush3.bf16.msra.mxu1 %v657_v32 }
 0x14a   : > { %v327_v33 = vpop.f32.mrb[0].mxu0 }
 0x14b   : > { %v593_v34 = vpop.f32.mrb[1].mxu0  ;;  %627 = vmatmul.mubr.f32.vlgmr.msra.gmra.mrb[0].mxu1 %v327_v33 }
 0x21e   : > { %v419_v35 = vpop.f32.mrb[0].mxu1 }
 0x21f   : > { %423 = vst [vmem:[%s245_s20] sm:$0xff] %v419_v35  ;;  %v628_v36 = vpop.f32.mrb[1].mxu1 }
 0x220   : > { %846 = shalt.err (!%p843_p11)
}
 0x221   : > { %s847_s4 = scalar_lea.hbm %s1160_s8, 128  ;;  %s851_s9 = scalar_lea.hbm %s1210_s3, 256 }
 0x222   : > { %p848_p0 = scmp.ne.s32.totalorder %s1160_s8, %s847_s4  ;;  %p852_p6 = scmp.lt.u32.totalorder %s1160_s8, %s1210_s3 }
 0x223   : > { %p853_p7 = scmp.lt.u32.totalorder %s851_s9, %s847_s4  ;;  %p855_p8 = scmp.lt.u32.totalorder %s847_s4, %s1160_s8 }
 0x224   : > { %p849_p4 = pnand %p848_p0, %p1225_p12 }
 0x225   : > { %p854_p2 = por %p853_p7, %p852_p6 }
 0x226   : > { %p850_p13 = pneg %p849_p4 }
 0x227   : > { %p856_p1 = por %p855_p8, %p854_p2 }
 0x229   : > { %p857_p10 = pnand %p856_p1, %p850_p13 }
 0x22b   : > { %860 = shalt.err (!%p857_p10)
}
 0x22c   : > { %669 = dma.vmem_to_hbm [thread:$0]  (%p1225_p12), %s1155_s22, 128, %s1160_s8, %s425_s26  }
 0x22d PF: > { %s451_s28 = sand.u32 1, %s899_s12   ;;  %p1226_p3 = scmp.ne.s32.totalorder %s1218_s23, 0 }
 0x22e   : > { %p1227_p5 = scmp.ge.s32.totalorder %s919_s17, 2  ;;  %s452_s20 = scalar_lea.sflag [#allocation5], %s451_s28 }
 0x230   : > { %p683_p9 = pnand %p1227_p5, %p1226_p3 }
 0x232   : > { %894 = dma.done.wait (!%p683_p9), %s452_s20, 128  }
 0x233   : > { %896 = vsyncadd (!%p683_p9), %s452_s20, 4294967168  ;;  %s20_s17 = sadd.s32 1, %s919_s17   ;;  %s1228_s12 = smov %s903_s13 }
 0x234   : > { %p17_p11 = scmp.ge.s32.totalorder %s20_s17, 4   ;;  %s1229_s13 = smov %s907_s14 }
 0x235   : > { %s1230_s14 = smov %s1092_s18  ;;  %s1231_s15 = smov %s915_s16 }
 0x236   : > { %s1232_s16 = smov %s1234_s19  ;;  %19 = sbr.rel (!%p17_p11) target bundleno = 7 (0x7), region = 94 }
 0x23d   :  { %457 = vsyncpa [#allocation4], 1 }
 0x23e   :  { %459 = vsyncpa [#allocation4 + $0x1], 1 }
 0x23f   :  { %460 = vsyncpa [#allocation7], 1 }
 0x240   :  { %461 = vsyncpa [#allocation5], 1 }
 0x241   :  { %463 = vsyncpa [#allocation5 + $0x1], 1 }

</bundles_post_ra>
